<compile_context>
chip_gen: v7x
topology: tpu7x:2x2x1
jax: 0.10.0
libtpu: 0.0.40
codegen_flags: <defaults>
</compile_context>

<pallas_src>
import functools

import jax
import jax.numpy as jnp
from jax.experimental import pallas as pl
from jax.experimental.pallas import tpu as pltpu


def _round_up(x, m):
    return (x + m - 1) // m * m


def _vmem_capacity_bytes():
    try:
        return int(pltpu.get_tpu_info().vmem_capacity_bytes)
    except Exception:
        return 128 * 1024 * 1024  # v5e / v6e default


def _pick_channel_tile(n, c_pad, hw_pad, itemsize, vmem_cap):
    """Channel tile: multiple of 8, divides c_pad, per-block bytes under a
    generation-aware target, and (when possible) >= 4 grid steps so pipelining
    and the v7x core split have work to overlap."""
    if vmem_cap <= 64 * 1024 * 1024:        # v7x: 64 MiB VMEM per TensorCore
        target_block_bytes = 4 * 1024 * 1024
    else:                                    # v5e / v6e: 128 MiB VMEM
        target_block_bytes = 2 * 1024 * 1024
    min_grid = 4
    per_chan_bytes = n * hw_pad * max(itemsize, 4)  # f32 temps dominate
    best = 8
    for tc in range(8, c_pad + 1, 8):
        if c_pad % tc:
            continue
        if tc * per_chan_bytes > target_block_bytes:
            break                            # blocks only grow with tc
        if c_pad // tc < min_grid and tc > 8:
            continue                         # keep enough grid steps
        best = tc
    return best


def _cbn_kernel(x_ref, g_ref, b_ref, o_ref, *, eps, count):
    # x_ref / o_ref: (N, TC, HWp) ; g_ref / b_ref: (N, TC, 1)
    x = x_ref[...].astype(jnp.float32)

    # One-pass stats.  Batch axis first (VPU adds), then one lane (XLU) reduce.
    s1 = jnp.sum(x, axis=0, keepdims=True)              # (1, TC, HWp)
    s2 = jnp.sum(x * x, axis=0, keepdims=True)          # (1, TC, HWp)
    inv_cnt = jnp.float32(1.0 / count)                  # count = true N*H*W
    mean = jnp.sum(s1, axis=2, keepdims=True) * inv_cnt        # (1, TC, 1)
    mean_sq = jnp.sum(s2, axis=2, keepdims=True) * inv_cnt     # (1, TC, 1)
    var = jnp.maximum(mean_sq - mean * mean, jnp.float32(0.0))  # clamp >= 0
    inv_std = jax.lax.rsqrt(var + jnp.float32(eps))             # EUP rsqrt

    gamma = g_ref[...].astype(jnp.float32)               # (N, TC, 1)
    beta = b_ref[...].astype(jnp.float32)                # (N, TC, 1)

    # Fold normalization + conditional affine into one scale/shift sweep.
    scale = gamma * inv_std
    shift = beta - mean * scale
    o_ref[...] = (x * scale + shift).astype(o_ref.dtype)


def conditional_batchnorm2d(x, y, weight_table, bias_table, eps=1e-5):
    """x: (N, C, H, W); y: (N,) int32 class ids.

    weight_table / bias_table: (num_classes, C) embedding tables.
    """
    n, c, h, w = x.shape
    hw = h * w

    # Embedding lookups (gather) are glue — plain JAX.
    gamma = weight_table[y].astype(x.dtype)   # (N, C)
    beta = bias_table[y].astype(x.dtype)      # (N, C)

    # Lane-dense HW (multiple of 128) and sublane-aligned C (multiple of 8).
    hw_pad = _round_up(hw, 128)
    c_pad = _round_up(c, 8)

    x2 = x.reshape(n, c, hw)
    if hw_pad != hw or c_pad != c:
        # Zero pads: do not perturb sum(x)/sum(x*x); padded region sliced off.
        x2 = jnp.pad(x2, ((0, 0), (0, c_pad - c), (0, hw_pad - hw)))
    if c_pad != c:
        gamma = jnp.pad(gamma, ((0, 0), (0, c_pad - c)))
        beta = jnp.pad(beta, ((0, 0), (0, c_pad - c)))
    gamma = gamma[:, :, None]                 # (N, Cp, 1)
    beta = beta[:, :, None]                   # (N, Cp, 1)

    vmem_cap = _vmem_capacity_bytes()
    tc = _pick_channel_tile(n, c_pad, hw_pad, x2.dtype.itemsize, vmem_cap)
    grid = (c_pad // tc,)

    out = pl.pallas_call(
        functools.partial(_cbn_kernel, eps=eps, count=float(n * hw)),
        out_shape=jax.ShapeDtypeStruct((n, c_pad, hw_pad), x.dtype),
        grid_spec=pl.GridSpec(
            grid=grid,
            in_specs=[
                pl.BlockSpec((n, tc, hw_pad), lambda ci: (0, ci, 0)),
                pl.BlockSpec((n, tc, 1), lambda ci: (0, ci, 0)),
                pl.BlockSpec((n, tc, 1), lambda ci: (0, ci, 0)),
            ],
            out_specs=pl.BlockSpec((n, tc, hw_pad), lambda ci: (0, ci, 0)),
        ),
        compiler_params=pltpu.CompilerParams(
            dimension_semantics=("parallel",),
            vmem_limit_bytes=int(0.8 * vmem_cap),
        ),
    )(x2, gamma, beta)

    out = out[:, :c, :hw]
    return out.reshape(n, c, h, w)


if __name__ == "__main__":
    key = jax.random.PRNGKey(0)
    kx, ky = jax.random.split(key)

    num_classes = 10
    N, C, H, W = 2, 4, 16, 16
    eps = 1e-5

    x = jax.random.normal(kx, (N, C, H, W), dtype=jnp.float32)
    y = jax.random.randint(ky, (N,), 0, num_classes, dtype=jnp.int32)

    # Deterministic parameter init matching the module's __init__:
    #   nn.init.ones_(self.weights.weight); nn.init.zeros_(self.biases.weight)
    weight_table = jnp.ones((num_classes, C), dtype=jnp.float32)
    bias_table = jnp.zeros((num_classes, C), dtype=jnp.float32)

    out = conditional_batchnorm2d(x, y, weight_table, bias_table, eps=eps)
    out = jax.block_until_ready(out)

    # Pure-JAX reference (training-mode BatchNorm2d, biased variance).
    mean = jnp.mean(x, axis=(0, 2, 3), keepdims=True)
    var = jnp.mean((x - mean) ** 2, axis=(0, 2, 3), keepdims=True)
    x_hat = (x - mean) / jnp.sqrt(var + eps)
    ref = x_hat * weight_table[y][:, :, None, None] + bias_table[y][:, :, None, None]

    assert out.shape == (N, C, H, W)
    assert jnp.allclose(out, ref, atol=1e-5, rtol=1e-5), "mismatch vs reference"
    print("KERNEL_OK")
</pallas_src>

<mosaic_0001>
module attributes {stable_mosaic.version = 11 : i64} {
  func.func @_cbn_kernel(%arg0: i32, %arg1: memref<2x8x256xf32, #tpu.memory_space<vmem>>, %arg2: memref<2x8x1xf32, #tpu.memory_space<vmem>>, %arg3: memref<2x8x1xf32, #tpu.memory_space<vmem>>, %arg4: memref<2x8x256xf32, #tpu.memory_space<vmem>>) attributes {dimension_semantics = [#tpu.dimension_semantics<parallel>], iteration_bounds = array<i64: 1>, scalar_prefetch = 0 : i64, scratch_operands = 0 : i64, tpu.core_type = #tpu.core_type<tc>, window_params = [{transform_indices = @transform_0, window_bounds = array<i64: 2, 8, 256>}, {transform_indices = @transform_1, window_bounds = array<i64: 2, 8, 1>}, {transform_indices = @transform_2, window_bounds = array<i64: 2, 8, 1>}, {transform_indices = @transform_3, window_bounds = array<i64: 2, 8, 256>}]} {
    %c0 = arith.constant 0 : index
    %c0_0 = arith.constant 0 : index
    %c0_1 = arith.constant 0 : index
    %0 = vector.load %arg1[%c0, %c0_0, %c0_1] : memref<2x8x256xf32, #tpu.memory_space<vmem>>, vector<2x8x256xf32>
    %cst = arith.constant dense<0.000000e+00> : vector<8x256xf32>
    %1 = vector.multi_reduction <add>, %0, %cst [0] : vector<2x8x256xf32> to vector<8x256xf32>
    %2 = vector.shape_cast %1 : vector<8x256xf32> to vector<1x8x256xf32>
    %3 = arith.mulf %0, %0 : vector<2x8x256xf32>
    %cst_2 = arith.constant dense<0.000000e+00> : vector<8x256xf32>
    %4 = vector.multi_reduction <add>, %3, %cst_2 [0] : vector<2x8x256xf32> to vector<8x256xf32>
    %5 = vector.shape_cast %4 : vector<8x256xf32> to vector<1x8x256xf32>
    %cst_3 = arith.constant dense<0.000000e+00> : vector<1x8xf32>
    %6 = vector.multi_reduction <add>, %2, %cst_3 [2] : vector<1x8x256xf32> to vector<1x8xf32>
    %7 = vector.shape_cast %6 : vector<1x8xf32> to vector<1x8x1xf32>
    %cst_4 = arith.constant 0.001953125 : f32
    %8 = vector.broadcast %cst_4 : f32 to vector<1x8x1xf32>
    %9 = arith.mulf %7, %8 : vector<1x8x1xf32>
    %cst_5 = arith.constant dense<0.000000e+00> : vector<1x8xf32>
    %10 = vector.multi_reduction <add>, %5, %cst_5 [2] : vector<1x8x256xf32> to vector<1x8xf32>
    %11 = vector.shape_cast %10 : vector<1x8xf32> to vector<1x8x1xf32>
    %cst_6 = arith.constant 0.001953125 : f32
    %12 = vector.broadcast %cst_6 : f32 to vector<1x8x1xf32>
    %13 = arith.mulf %11, %12 : vector<1x8x1xf32>
    %14 = arith.mulf %9, %9 : vector<1x8x1xf32>
    %15 = arith.subf %13, %14 : vector<1x8x1xf32>
    %cst_7 = arith.constant 0.000000e+00 : f32
    %16 = vector.broadcast %cst_7 : f32 to vector<1x8x1xf32>
    %17 = arith.maximumf %15, %16 : vector<1x8x1xf32>
    %cst_8 = arith.constant 9.99999974E-6 : f32
    %18 = vector.broadcast %cst_8 : f32 to vector<1x8x1xf32>
    %19 = arith.addf %17, %18 : vector<1x8x1xf32>
    %20 = math.rsqrt %19 : vector<1x8x1xf32>
    %c0_9 = arith.constant 0 : index
    %c0_10 = arith.constant 0 : index
    %c0_11 = arith.constant 0 : index
    %21 = vector.load %arg2[%c0_9, %c0_10, %c0_11] : memref<2x8x1xf32, #tpu.memory_space<vmem>>, vector<2x8x1xf32>
    %c0_12 = arith.constant 0 : index
    %c0_13 = arith.constant 0 : index
    %c0_14 = arith.constant 0 : index
    %22 = vector.load %arg3[%c0_12, %c0_13, %c0_14] : memref<2x8x1xf32, #tpu.memory_space<vmem>>, vector<2x8x1xf32>
    %23 = vector.broadcast %20 : vector<1x8x1xf32> to vector<2x8x1xf32>
    %24 = arith.mulf %21, %23 : vector<2x8x1xf32>
    %25 = vector.broadcast %9 : vector<1x8x1xf32> to vector<2x8x1xf32>
    %26 = arith.mulf %25, %24 : vector<2x8x1xf32>
    %27 = arith.subf %22, %26 : vector<2x8x1xf32>
    %28 = vector.broadcast %24 : vector<2x8x1xf32> to vector<2x8x256xf32>
    %29 = arith.mulf %0, %28 : vector<2x8x256xf32>
    %30 = vector.broadcast %27 : vector<2x8x1xf32> to vector<2x8x256xf32>
    %31 = arith.addf %29, %30 : vector<2x8x256xf32>
    %c0_15 = arith.constant 0 : index
    %c0_16 = arith.constant 0 : index
    %c0_17 = arith.constant 0 : index
    %32 = vector.load %arg4[%c0_15, %c0_16, %c0_17] : memref<2x8x256xf32, #tpu.memory_space<vmem>>, vector<2x8x256xf32>
    tpu.vector_store %arg4[%c0_15, %c0_16, %c0_17], %31 {strides = array<i32>} : memref<2x8x256xf32, #tpu.memory_space<vmem>>, vector<2x8x256xf32>,
    return
  }
  func.func @transform_0(%arg0: i32) -> (i32, i32, i32) {
    %c0_i32 = arith.constant 0 : i32
    %c0_i32_0 = arith.constant 0 : i32
    %c0_i32_1 = arith.constant 0 : i32
    return %c0_i32, %arg0, %c0_i32_0 : i32, i32, i32
  }
  func.func @transform_1(%arg0: i32) -> (i32, i32, i32) {
    %c0_i32 = arith.constant 0 : i32
    %c0_i32_0 = arith.constant 0 : i32
    %c0_i32_1 = arith.constant 0 : i32
    return %c0_i32, %arg0, %c0_i32_0 : i32, i32, i32
  }
  func.func @transform_2(%arg0: i32) -> (i32, i32, i32) {
    %c0_i32 = arith.constant 0 : i32
    %c0_i32_0 = arith.constant 0 : i32
    %c0_i32_1 = arith.constant 0 : i32
    return %c0_i32, %arg0, %c0_i32_0 : i32, i32, i32
  }
  func.func @transform_3(%arg0: i32) -> (i32, i32, i32) {
    %c0_i32 = arith.constant 0 : i32
    %c0_i32_0 = arith.constant 0 : i32
    %c0_i32_1 = arith.constant 0 : i32
    return %c0_i32, %arg0, %c0_i32_0 : i32, i32, i32
  }
}

</mosaic_0001>

<bundles_post_ra>
// kernel: tpu_custom_call.1
= control target key start
LH: loop header
LB: loop body
LE: loop exit
PB: predicated region body
PF: predicated region fallthrough
CT: control target
= control target key end

     0   :  { %8 = vsyncpa [#allocation3], 0  ;;  %s337_s0 = inlined_call_operand.hbm [shape: f32[2,8,256], index: 0, kind: input, shape index: {}]   ;;  %s338_s1 = inlined_call_operand.hbm [shape: f32[2,8,1], index: 1, kind: input, shape index: {}]   ;;  %s339_s2 = inlined_call_operand.hbm [shape: f32[2,8,1], index: 2, kind: input, shape index: {}]   ;;  %s340_s3 = inlined_call_operand.hbm [shape: f32[2,8,256], index: 3, kind: output, shape index: {}]  }
   0x1   :  { %9 = vsyncpa [#allocation6], 0 }
   0x2   :  { %10 = vsyncpa [#allocation4], 0  ;;  %s248_s12 = smov [#allocation5]   ;;  %s154_s16 = scalar_lea.hbm %s338_s1, 256 }
   0x3   :  { %s28_s13 = sshll.u32 %s248_s12, 4  ;;  %p155_p0 = scmp.ne.s32.totalorder %s338_s1, %s154_s16  ;;  %s29_s13 = int_to_ptr.vmem [resolvable:$true] %s28_s13 }
   0x4   :  { %p158_p1 = scmp.lt.u32.totalorder %s154_s16, %s338_s1 }
   0x6   :  { %p160_p2 = pnand %p158_p1, %p155_p0 }
   0x8   :  { %163 = shalt.err (!%p160_p2)
}
   0x9   :  { %s164_s21 = scalar_lea.vmem %s29_s13, 256  ;;  %p169_p4 = scmp.lt.s32.totalorder %s29_s13, %s29_s13 }
   0xa   :  { %p165_p3 = scmp.ne.s32.totalorder %s29_s13, %s164_s21  ;;  %p170_p5 = scmp.lt.s32.totalorder %s164_s21, %s164_s21 }
   0xc   :  { %p171_p6 = por %p170_p5, %p169_p4 }
   0xe   :  { %p172_p7 = pnand %p171_p6, %p165_p3 }
  0x10   :  { %175 = shalt.err (!%p172_p7)
}
  0x11   :  { %s249_s22 = smov 128   ;;  %s250_s23 = smov 8  }
  0x12   :  { %34 = dma.hbm_to_vmem [thread:$0]  %s338_s1, 256, %s29_s13, [#allocation6], %s249_s22, %s249_s22, %s250_s23  }
  0x13   :  { %s251_s26 = smov [#allocation2]   ;;  %s176_s30 = scalar_lea.hbm %s337_s0, 512 }
  0x14   :  { %s16_s27 = sshll.u32 %s251_s26, 4  ;;  %p177_p8 = scmp.ne.s32.totalorder %s337_s0, %s176_s30  ;;  %s17_s27 = int_to_ptr.vmem [resolvable:$true] %s16_s27 }
  0x15   :  { %p180_p9 = scmp.lt.u32.totalorder %s176_s30, %s337_s0 }
  0x17   :  { %p182_p10 = pnand %p180_p9, %p177_p8 }
  0x19   :  { %185 = shalt.err (!%p182_p10)
}
  0x1a   :  { %s186_s8 = scalar_lea.vmem %s17_s27, 512  ;;  %p191_p12 = scmp.lt.s32.totalorder %s17_s27, %s17_s27 }
  0x1b   :  { %p187_p11 = scmp.ne.s32.totalorder %s17_s27, %s186_s8  ;;  %p192_p13 = scmp.lt.s32.totalorder %s186_s8, %s186_s8 }
  0x1d   :  { %p193_p0 = por %p192_p13, %p191_p12 }
  0x1f   :  { %p194_p1 = pnand %p193_p0, %p187_p11 }
  0x21   :  { %197 = shalt.err (!%p194_p1)
}
  0x22   :  { %s252_s1 = smov 256   ;;  %s253_s9 = smov 16  }
  0x23   :  { %22 = dma.hbm_to_vmem [thread:$0]  %s337_s0, 512, %s17_s27, [#allocation3], %s252_s1, %s252_s1, %s253_s9  }
  0x24   :  { %s254_s12 = smov [#allocation7]   ;;  %s198_s16 = scalar_lea.hbm %s339_s2, 256 }
  0x25   :  { %s40_s13 = sshll.u32 %s254_s12, 4  ;;  %p199_p2 = scmp.ne.s32.totalorder %s339_s2, %s198_s16  ;;  %s41_s13 = int_to_ptr.vmem [resolvable:$true] %s40_s13 }
  0x26   :  { %p202_p3 = scmp.lt.u32.totalorder %s198_s16, %s339_s2 }
  0x28   :  { %p204_p4 = pnand %p202_p3, %p199_p2 }
  0x2a   :  { %207 = shalt.err (!%p204_p4)
}
  0x2b   :  { %s208_s21 = scalar_lea.vmem %s41_s13, 256  ;;  %p213_p6 = scmp.lt.s32.totalorder %s41_s13, %s41_s13 }
  0x2c   :  { %p209_p5 = scmp.ne.s32.totalorder %s41_s13, %s208_s21  ;;  %p214_p7 = scmp.lt.s32.totalorder %s208_s21, %s208_s21 }
  0x2e   :  { %p215_p8 = por %p214_p7, %p213_p6 }
  0x30   :  { %p216_p9 = pnand %p215_p8, %p209_p5 }
  0x32   :  { %219 = shalt.err (!%p216_p9)
}
  0x33   :  { %46 = dma.hbm_to_vmem [thread:$0]  %s339_s2, 256, %s41_s13, [#allocation6], %s249_s22, %s249_s22, %s250_s23  }
  0x34   :  { %242 = dma.done.wait [#allocation3], 512  }
  0x35   :  { %243 = vsyncadd [#allocation3], 4294966784 }
  0x36   :  { %244 = dma.done.wait [#allocation6], 512  }
  0x37   :  { %245 = vsyncadd [#allocation6], 4294966784  ;;  %v56_v0 = vld [vmem:[#allocation2] sm:$0xff]  ;;  %v57_v1 = vld [vmem:[#allocation2 + $0x8] sm:$0xff]  ;;  %v255_v14 = vmov 0   ;;  %s256_s2 = smov [#allocation8]  }
  0x38   :  { %v58_v2 = vld [vmem:[#allocation2 + $0x10] sm:$0xff]  ;;  %v59_v3 = vld [vmem:[#allocation2 + $0x18] sm:$0xff]  ;;  %v62_v5 = vmul.f32 %v56_v0, %v56_v0  ;;  %v63_v6 = vmul.f32 %v57_v1, %v57_v1  ;;  %150 = vset.pattern.permute.xlu1 %v255_v14  ;;  %151 = vset.pattern.permute.xlu0 %v255_v14  ;;  %v81_v23 = vld [vmem:[#allocation5] sm:$0xff]  ;;  %s128_s22 = sshll.u32 %s256_s2, 4  ;;  %s129_s22 = int_to_ptr.vmem [resolvable:$true] %s128_s22 }
  0x39   :  { %v60_v4 = vadd.f32 %v58_v2, %v56_v0  ;;  %v64_v7 = vmul.f32 %v58_v2, %v58_v2  ;;  %v61_v8 = vadd.f32 %v59_v3, %v57_v1  ;;  %v65_v9 = vmul.f32 %v59_v3, %v59_v3  ;;  %v82_v24 = vld [vmem:[#allocation5 + $0x8] sm:$0xff]  ;;  %v83_v28 = vld [vmem:[#allocation7] sm:$0xff]  ;;  %v84_v32 = vld [vmem:[#allocation7 + $0x8] sm:$0xff]  ;;  %s220_s23 = scalar_lea.vmem %s129_s22, 512  ;;  %p225_p11 = scmp.lt.s32.totalorder %s129_s22, %s129_s22 }
  0x3a   :  { %p221_p10 = scmp.ne.s32.totalorder %s129_s22, %s220_s23  ;;  %p226_p12 = scmp.lt.s32.totalorder %s220_s23, %s220_s23 }
  0x3b   :  { %v66_v10 = vadd.f32 %v64_v7, %v62_v5  ;;  %v68_v11 = vadd.f32 %v61_v8, %v60_v4  ;;  %v67_v12 = vadd.f32 %v65_v9, %v63_v6 }
  0x3c   :  { %p227_p13 = por %p226_p12, %p225_p11 }
  0x3d   :  { %69 = vadd.xlane.f32.xlu0 %v68_v11  ;;  %v72_v13 = vadd.f32 %v67_v12, %v66_v10 }
  0x3e   :  { %p228_p0 = pnand %p227_p13, %p221_p10 }
  0x41   :  { %73 = vadd.xlane.f32.xlu0 %v72_v13 }
  0xca   :  { %v70_v15 = vpop.xlane.xlu0 %69 }
  0xcb   :  { %v71_v16 = vmul.f32 0.001953125, %v70_v15 }
  0xcd   :  { %v76_v18 = vmul.f32 %v71_v16, %v71_v16 }
  0xce   :  { %v74_v17 = vpop.xlane.xlu0 %73 }
  0xcf   :  { %v75_v19 = vmul.f32 0.001953125, %v74_v17 }
  0xd1   :  { %v77_v20 = vsub.f32 %v75_v19, %v76_v18 }
  0xd3   :  { %v78_v21 = vmax.f32 %v77_v20, 0.0 }
  0xd5   :  { %v79_v22 = vadd.f32 1e-05, %v78_v21 }
  0xd7   :  { %152 = vrsqrt.f32 %v79_v22 }
  0xe1   :  { %v153_v25 = vpop.eup %152 }
  0xe2   :  { %v85_v26 = vmul.f32 %v153_v25, %v81_v23  ;;  %v86_v27 = vmul.f32 %v153_v25, %v82_v24 }
  0xe4   :  { %93 = vperm.xlu1 %150, %v85_v26   ;;  %v87_v29 = vmul.f32 %v85_v26, %v71_v16  ;;  %v88_v31 = vmul.f32 %v86_v27, %v71_v16 }
  0xe6   :  { %v89_v30 = vsub.f32 %v83_v28, %v87_v29  ;;  %v90_v33 = vsub.f32 %v84_v32, %v88_v31 }
  0xe8   :  { %98 = vperm.xlu1 %150, %v86_v27   ;;  %107 = vperm.xlu0 %151, %v89_v30  }
  0xec   :  { %112 = vperm.xlu1 %150, %v90_v33  }
 0x163   :  { %v94_v34 = vpop.permute.xlu1 %93 }
 0x164   :  { %v101_v35 = vmul.f32 %v94_v34, %v56_v0  ;;  %v102_v36 = vmul.f32 %v94_v34, %v57_v1 }
 0x167   :  { %v99_v37 = vpop.permute.xlu1 %98  ;;  %v108_v38 = vpop.permute.xlu0 %107 }
 0x168   :  { %v115_v39 = vadd.f32 %v108_v38, %v101_v35  ;;  %v116_v40 = vadd.f32 %v108_v38, %v102_v36  ;;  %v103_v41 = vmul.f32 %v99_v37, %v58_v2  ;;  %v104_v42 = vmul.f32 %v99_v37, %v59_v3 }
 0x16a   :  { %119 = vst [vmem:[#allocation8] sm:$0xff] %v115_v39  ;;  %120 = vst [vmem:[#allocation8 + $0x8] sm:$0xff] %v116_v40 }
 0x16b   :  { %v113_v43 = vpop.permute.xlu1 %112 }
 0x16c   :  { %v117_v44 = vadd.f32 %v113_v43, %v103_v41  ;;  %v118_v45 = vadd.f32 %v113_v43, %v104_v42 }
 0x16e   :  { %121 = vst [vmem:[#allocation8 + $0x10] sm:$0xff] %v117_v44  ;;  %122 = vst [vmem:[#allocation8 + $0x18] sm:$0xff] %v118_v45 }
 0x16f   :  { %231 = shalt.err (!%p228_p0)
}
 0x170   :  { %s232_s27 = scalar_lea.hbm %s340_s3, 512 }
 0x171   :  { %p233_p1 = scmp.ne.s32.totalorder %s340_s3, %s232_s27  ;;  %p236_p2 = scmp.lt.u32.totalorder %s232_s27, %s340_s3 }
 0x173   :  { %p238_p3 = pnand %p236_p2, %p233_p1 }
 0x175   :  { %241 = shalt.err (!%p238_p3)
}
 0x176   :  { %134 = dma.vmem_to_hbm [thread:$0]  %s129_s22, 512, %s340_s3, [#allocation4], %s252_s1, %s252_s1, %s253_s9  }
 0x177   :  { %246 = dma.done.wait [#allocation4], 512  }
 0x178   :  { %247 = vsyncadd [#allocation4], 4294966784 }
 0x179   :  { %138 = vsyncpa [#allocation3], 1 }
 0x17a   :  { %139 = vsyncpa [#allocation6], 1 }
 0x17b   :  { %140 = vsyncpa [#allocation4], 1 }

</bundles_post_ra>
